<compile_context>
chip_gen: v7x
topology: tpu7x:2x2x1
jax: 0.10.0
libtpu: 0.0.40
codegen_flags: <defaults>
</compile_context>

<pallas_src>
import jax
import jax.numpy as jnp
from jax.experimental import pallas as pl
from jax.experimental.pallas import tpu as pltpu

_NUM_FFT_FRAME_LENGTHS = 3
_NUM_MEL_BANDS = 80
_FEAT = _NUM_MEL_BANDS * _NUM_FFT_FRAME_LENGTHS  # 240
_PACK = 8                                        # rows packed per lane-dense row
_WIDTH = _PACK * _FEAT                           # 1920 = 15 * 128 (lane dense)


def _normalize_kernel(x_ref, mom_ref, o_ref):
    # mom_ref: [2, WIDTH] -> row 0 = mean (tiled x8), row 1 = 1/std (tiled x8).
    mean = mom_ref[0:1, :]
    inv_std = mom_ref[1:2, :]
    o_ref[...] = (x_ref[...] - mean) * inv_std


def spectrogram_normalize(x, mean, std, *, row_tile=2048):
    """x: [B, T, 80, 3]; mean, std: [80, 3]. Returns same shape/dtype as x."""
    B, T, M, F = x.shape
    assert (M, F) == (_NUM_MEL_BANDS, _NUM_FFT_FRAME_LENGTHS)
    rows = B * T

    # --- Lane-dense packing: 8 original rows -> 1 row of width 1920. ---
    x2 = x.reshape(rows, _FEAT)
    pad = (-rows) % _PACK
    if pad:
        x2 = jnp.pad(x2, ((0, pad), (0, 0)))
    padded_rows = rows + pad
    R = padded_rows // _PACK
    x3 = x2.reshape(R, _WIDTH)

    # Moments: single [2, 1920] input (mean tiled x8 ; inv_std tiled x8).
    mean_w = jnp.tile(mean.reshape(1, _FEAT).astype(x.dtype), (1, _PACK))
    inv_std_w = jnp.tile((1.0 / std).reshape(1, _FEAT).astype(x.dtype), (1, _PACK))
    moments = jnp.concatenate([mean_w, inv_std_w], axis=0)  # [2, 1920]

    # --- Tile selection (in packed rows). ---
    # row_tile original rows -> row_tile/8 packed rows per block.
    # Default 2048 original rows -> 256 packed rows -> ~1.97 MiB/block,
    # ~7.9 MiB double-buffered for x-in + out: fits every generation's
    # scoped VMEM default (v5e 16 MiB, v6e/v7x 32 MiB) with headroom.
    tile = max(_PACK, (max(row_tile // _PACK, 1) // 8) * 8)
    if tile >= R:
        tile = R  # full-extent block (satisfies the (8,128) rule by equality)
    grid = (pl.cdiv(R, tile),)

    cost = pl.CostEstimate(
        flops=2 * padded_rows * _FEAT,
        transcendentals=0,
        bytes_accessed=2 * R * _WIDTH * 4 + 2 * _WIDTH * 4,
    )

    out3 = pl.pallas_call(
        _normalize_kernel,
        out_shape=jax.ShapeDtypeStruct((R, _WIDTH), x.dtype),
        grid_spec=pltpu.PrefetchScalarGridSpec(
            num_scalar_prefetch=0,
            grid=grid,
            in_specs=[
                pl.BlockSpec((tile, _WIDTH), lambda i: (i, 0)),
                pl.BlockSpec((2, _WIDTH), lambda i: (0, 0)),
            ],
            out_specs=pl.BlockSpec((tile, _WIDTH), lambda i: (i, 0)),
        ),
        compiler_params=pltpu.CompilerParams(
            dimension_semantics=("parallel",),   # v7x: shard rows over 2 TCs
            vmem_limit_bytes=32 << 20,           # explicit, safe on v5e/v6e/v7x
        ),
        cost_estimate=cost,
    )(x3, moments)

    out2 = out3.reshape(padded_rows, _FEAT)
    if pad:
        out2 = out2[:rows]
    return out2.reshape(B, T, M, F)


if __name__ == "__main__":
    key = jax.random.PRNGKey(0)
    kx, km, ks = jax.random.split(key, 3)

    # Small shapes consistent with the module: batch=2, num_frames=8, 80 mel, 3 ffts.
    B, T = 2, 8
    x = jax.random.normal(
        kx, (B, T, _NUM_MEL_BANDS, _NUM_FFT_FRAME_LENGTHS), dtype=jnp.float32
    )

    # Deterministic synthetic "moments" (module defaults are zeros/ones; use
    # nontrivial deterministic values to exercise the broadcast math).
    mean = 0.1 * jax.random.normal(
        km, (_NUM_MEL_BANDS, _NUM_FFT_FRAME_LENGTHS), dtype=jnp.float32
    )
    std = 1.0 + 0.05 * jax.random.uniform(
        ks, (_NUM_MEL_BANDS, _NUM_FFT_FRAME_LENGTHS), dtype=jnp.float32
    )

    out = spectrogram_normalize(x, mean, std)
    out = jax.block_until_ready(out)

    # Reference check against plain JAX broadcasting (same as PyTorch semantics).
    # (kernel uses (x - mean) * (1/std): ~1 ulp from exact division, within tol)
    ref = (x - mean) / std
    assert out.shape == x.shape and out.dtype == x.dtype
    assert jnp.allclose(out, ref, atol=1e-6, rtol=1e-6)

    print("KERNEL_OK")
</pallas_src>

<mosaic_0001>
module attributes {stable_mosaic.version = 11 : i64} {
  func.func @_normalize_kernel(%arg0: i32, %arg1: memref<2x1920xf32, #tpu.memory_space<vmem>>, %arg2: memref<2x1920xf32, #tpu.memory_space<vmem>>, %arg3: memref<2x1920xf32, #tpu.memory_space<vmem>>) attributes {dimension_semantics = [#tpu.dimension_semantics<parallel>], iteration_bounds = array<i64: 1>, scalar_prefetch = 0 : i64, scratch_operands = 0 : i64, tpu.core_type = #tpu.core_type<tc>, window_params = [{transform_indices = @transform_0, window_bounds = array<i64: 2, 1920>}, {pipeline_mode = #tpu.pipeline_mode<synchronous>, transform_indices = @transform_1, window_bounds = array<i64: 2, 1920>}, {transform_indices = @transform_2, window_bounds = array<i64: 2, 1920>}]} {
    %c0 = arith.constant 0 : index
    %c0_0 = arith.constant 0 : index
    %0 = vector.load %arg2[%c0, %c0_0] : memref<2x1920xf32, #tpu.memory_space<vmem>>, vector<1x1920xf32>
    %c1 = arith.constant 1 : index
    %c0_1 = arith.constant 0 : index
    %1 = vector.load %arg2[%c1, %c0_1] : memref<2x1920xf32, #tpu.memory_space<vmem>>, vector<1x1920xf32>
    %c0_2 = arith.constant 0 : index
    %c0_3 = arith.constant 0 : index
    %2 = vector.load %arg1[%c0_2, %c0_3] : memref<2x1920xf32, #tpu.memory_space<vmem>>, vector<2x1920xf32>
    %3 = vector.broadcast %0 : vector<1x1920xf32> to vector<2x1920xf32>
    %4 = arith.subf %2, %3 : vector<2x1920xf32>
    %5 = vector.broadcast %1 : vector<1x1920xf32> to vector<2x1920xf32>
    %6 = arith.mulf %4, %5 : vector<2x1920xf32>
    %c0_4 = arith.constant 0 : index
    %c0_5 = arith.constant 0 : index
    %7 = vector.load %arg3[%c0_4, %c0_5] : memref<2x1920xf32, #tpu.memory_space<vmem>>, vector<2x1920xf32>
    tpu.vector_store %arg3[%c0_4, %c0_5], %6 {strides = array<i32>} : memref<2x1920xf32, #tpu.memory_space<vmem>>, vector<2x1920xf32>,
    return
  }
  func.func @transform_0(%arg0: i32) -> (i32, i32) {
    %c0_i32 = arith.constant 0 : i32
    %c0_i32_0 = arith.constant 0 : i32
    return %arg0, %c0_i32 : i32, i32
  }
  func.func @transform_1(%arg0: i32) -> (i32, i32) {
    %c0_i32 = arith.constant 0 : i32
    %c0_i32_0 = arith.constant 0 : i32
    %c0_i32_1 = arith.constant 0 : i32
    return %c0_i32, %c0_i32_0 : i32, i32
  }
  func.func @transform_2(%arg0: i32) -> (i32, i32) {
    %c0_i32 = arith.constant 0 : i32
    %c0_i32_0 = arith.constant 0 : i32
    return %arg0, %c0_i32 : i32, i32
  }
}

</mosaic_0001>

<bundles_post_ra>
// kernel: tpu_custom_call.1
= control target key start
LH: loop header
LB: loop body
LE: loop exit
PB: predicated region body
PF: predicated region fallthrough
CT: control target
= control target key end

     0   :  { %7 = vsyncpa [#allocation3], 0  ;;  %s532_s0 = inlined_call_operand.hbm [shape: f32[2,1920], index: 0, kind: input, shape index: {}]   ;;  %s533_s1 = inlined_call_operand.hbm [shape: f32[2,1920], index: 1, kind: input, shape index: {}]   ;;  %s534_s2 = inlined_call_operand.hbm [shape: f32[2,1920], index: 2, kind: output, shape index: {}]  }
   0x1   :  { %8 = vsyncpa [#allocation6], 0 }
   0x2   :  { %9 = vsyncpa [#allocation4], 0  ;;  %s417_s9 = smov [#allocation2]   ;;  %s418_s11 = smov [#allocation5]  }
   0x3   :  { %s16_s10 = sshll.u32 %s417_s9, 4  ;;  %s26_s12 = sshll.u32 %s418_s11, 4  ;;  %s17_s10 = int_to_ptr.vmem [resolvable:$true] %s16_s10  ;;  %s27_s12 = int_to_ptr.vmem [resolvable:$true] %s26_s12 }
   0x4   :  { %s345_s15 = scalar_lea.hbm %s532_s0, 480 }
   0x5   :  { %p346_p0 = scmp.ne.s32.totalorder %s532_s0, %s345_s15  ;;  %p349_p1 = scmp.lt.u32.totalorder %s345_s15, %s532_s0 }
   0x7   :  { %p351_p2 = pnand %p349_p1, %p346_p0 }
   0x9   :  { %354 = shalt.err (!%p351_p2)
}
   0xa   :  { %s355_s20 = scalar_lea.vmem %s17_s10, 480  ;;  %p360_p4 = scmp.lt.s32.totalorder %s17_s10, %s17_s10 }
   0xb   :  { %p356_p3 = scmp.ne.s32.totalorder %s17_s10, %s355_s20  ;;  %p361_p5 = scmp.lt.s32.totalorder %s355_s20, %s355_s20 }
   0xd   :  { %p362_p6 = por %p361_p5, %p360_p4 }
   0xf   :  { %p363_p7 = pnand %p362_p6, %p356_p3 }
  0x11   :  { %366 = shalt.err (!%p363_p7)
}
  0x12   :  { %19 = dma.hbm_to_vmem [thread:$0]  %s532_s0, 480, %s17_s10, [#allocation3]  }
  0x13   :  { %s367_s25 = scalar_lea.hbm %s533_s1, 480 }
  0x14   :  { %p368_p8 = scmp.ne.s32.totalorder %s533_s1, %s367_s25  ;;  %p371_p9 = scmp.lt.u32.totalorder %s367_s25, %s533_s1 }
  0x16   :  { %p373_p10 = pnand %p371_p9, %p368_p8 }
  0x18   :  { %376 = shalt.err (!%p373_p10)
}
  0x19   :  { %s377_s30 = scalar_lea.vmem %s27_s12, 480  ;;  %p382_p12 = scmp.lt.s32.totalorder %s27_s12, %s27_s12 }
  0x1a   :  { %p378_p11 = scmp.ne.s32.totalorder %s27_s12, %s377_s30  ;;  %p383_p13 = scmp.lt.s32.totalorder %s377_s30, %s377_s30 }
  0x1c   :  { %p384_p0 = por %p383_p13, %p382_p12 }
  0x1e   :  { %p385_p1 = pnand %p384_p0, %p378_p11 }
  0x20   :  { %388 = shalt.err (!%p385_p1)
}
  0x21   :  { %29 = dma.hbm_to_vmem [thread:$0]  %s533_s1, 480, %s27_s12, [#allocation6]  }
  0x22   :  { %411 = dma.done.wait [#allocation3], 480  }
  0x23   :  { %412 = vsyncadd [#allocation3], 4294966816 }
  0x24   :  { %413 = dma.done.wait [#allocation6], 480  }
  0x25   :  { %414 = vsyncadd [#allocation6], 4294966816  ;;  %v49_v0 = vlaneseq  ;;  %v419_v1 = vmov 1983009808   ;;  %v36_v11 = vld [vmem:[#allocation5] ss:$2 sm:$0xff] }
  0x26   :  { %v112_v2 = vunpack.c.l.s4 %v419_v1  ;;  %v40_v12 = vld [vmem:[#allocation5 + $0x1] ss:$2 sm:$0xff]  ;;  %v38_v36 = vld [vmem:[#allocation5 + $0x10] ss:$2 sm:$0xff]  ;;  %v42_v46 = vld [vmem:[#allocation5 + $0x11] ss:$2 sm:$0xff] }
  0x27   :  { %v50_v3 = vshrl.u32 %v49_v0, 7  ;;  %v43_v37 = vld [vmem:[#allocation2] sm:$0xff]  ;;  %v44_v52 = vld [vmem:[#allocation2 + $0x8] sm:$0xff]  ;;  %s420_s1 = smov [#allocation7]  }
  0x28   :  { %v113_v4 = vunpack.c.0.s8 %v112_v2  ;;  %s331_s4 = sshll.u32 %s420_s1, 4  ;;  %s332_s4 = int_to_ptr.vmem [resolvable:$true] %s331_s4 }
  0x29   :  { %v460_v5 = vsub.s32 0, %v50_v3  ;;  %v462_v6 = vsub.s32 1, %v50_v3  ;;  %v464_v7 = vsub.s32 2, %v50_v3  ;;  %v466_v8 = vsub.s32 3, %v50_v3  ;;  %s389_s5 = scalar_lea.vmem %s332_s4, 480  ;;  %p394_p3 = scmp.lt.s32.totalorder %s332_s4, %s332_s4 }
  0x2a   :  { %v468_v9 = vsub.s32 4, %v50_v3  ;;  %v470_v10 = vsub.s32 5, %v50_v3  ;;  %v472_v13 = vsub.s32 %v113_v4, %v50_v3  ;;  %v474_v14 = vsub.s32 6, %v50_v3  ;;  %p390_p2 = scmp.ne.s32.totalorder %s332_s4, %s389_s5  ;;  %p395_p4 = scmp.lt.s32.totalorder %s389_s5, %s389_s5 }
  0x2b   :  { %v79_v15 = vsub.s32 7, %v50_v3  ;;  %v52_v16 = vrot.slane %v36_v11, %v460_v5  ;;  %v56_v17 = vrot.slane %v36_v11, %v462_v6  ;;  %v60_v18 = vrot.slane %v36_v11, %v464_v7 }
  0x2c   :  { %v64_v19 = vrot.slane %v36_v11, %v466_v8  ;;  %v189_v20 = vrot.slane %v40_v12, %v460_v5  ;;  %v193_v21 = vrot.slane %v40_v12, %v462_v6  ;;  %v197_v22 = vrot.slane %v40_v12, %v464_v7  ;;  %p396_p5 = por %p395_p4, %p394_p3 }
  0x2d   :  { %v201_v23 = vrot.slane %v40_v12, %v466_v8  ;;  %v109_v24 = vcombine.low %v52_v16, %v56_v17  ;;  %v68_v26 = vrot.slane %v36_v11, %v468_v9  ;;  %v72_v27 = vrot.slane %v36_v11, %v470_v10 }
  0x2e   :  { %v110_v25 = vcombine.low %v60_v18, %v64_v19  ;;  %v246_v28 = vcombine.low %v189_v20, %v193_v21  ;;  %v76_v30 = vrot.slane %v36_v11, %v474_v14  ;;  %v80_v31 = vrot.slane %v36_v11, %v79_v15  ;;  %v45_v19 = vld [vmem:[#allocation2 + $0x10] sm:$0xff]  ;;  %p397_p6 = pnand %p396_p5, %p390_p2 }
  0x2f   :  { %v247_v29 = vcombine.low %v197_v22, %v201_v23  ;;  %v117_v32 = vrot.slane %v109_v24, %v472_v13  ;;  %v126_v34 = vcombine.low %v68_v26, %v72_v27  ;;  %v205_v35 = vrot.slane %v40_v12, %v468_v9 }
  0x30   :  { %v124_v33 = vrot.slane %v110_v25, %v472_v13  ;;  %v254_v38 = vrot.slane %v246_v28, %v472_v13  ;;  %v127_v40 = vcombine.low %v76_v30, %v80_v31  ;;  %v209_v41 = vrot.slane %v40_v12, %v470_v10  ;;  %v46_v30 = vld [vmem:[#allocation2 + $0x18] sm:$0x3f] }
  0x31   :  { %v261_v39 = vrot.slane %v247_v29, %v472_v13  ;;  %v134_v43 = vrot.slane %v126_v34, %v472_v13  ;;  %v213_v44 = vrot.slane %v40_v12, %v474_v14  ;;  %v217_v45 = vrot.slane %v40_v12, %v79_v15 }
  0x32   :  { %v125_v42 = vcombine.low %v117_v32, %v124_v33  ;;  %v141_v48 = vrot.slane %v127_v40, %v472_v13  ;;  %v263_v49 = vcombine.low %v205_v35, %v209_v41  ;;  %v84_v50 = vrot.slane %v38_v36, %v460_v5 }
  0x33   :  { %v262_v47 = vcombine.low %v254_v38, %v261_v39  ;;  %v264_v53 = vcombine.low %v213_v44, %v217_v45  ;;  %v88_v54 = vrot.slane %v38_v36, %v462_v6  ;;  %v92_v55 = vrot.slane %v38_v36, %v464_v7 }
  0x34   :  { %v180_v51 = vsub.f32 %v43_v37, %v125_v42  ;;  %v142_v56 = vcombine.low %v134_v43, %v141_v48  ;;  %v271_v57 = vrot.slane %v263_v49, %v472_v13  ;;  %v96_v58 = vrot.slane %v38_v36, %v466_v8 }
  0x35   :  { %v221_v59 = vrot.slane %v42_v46, %v460_v5  ;;  %v278_v61 = vrot.slane %v264_v53, %v472_v13  ;;  %v143_v62 = vcombine.low %v84_v50, %v88_v54  ;;  %v225_v63 = vrot.slane %v42_v46, %v462_v6 }
  0x36   :  { %v317_v60 = vmul.f32 %v262_v47, %v180_v51  ;;  %v181_v0 = vsub.f32 %v44_v52, %v142_v56  ;;  %v144_v1 = vcombine.low %v92_v55, %v96_v58  ;;  %v229_v2 = vrot.slane %v42_v46, %v464_v7 }
  0x37   :  { %v233_v3 = vrot.slane %v42_v46, %v466_v8  ;;  %v279_v4 = vcombine.low %v271_v57, %v278_v61  ;;  %v151_v11 = vrot.slane %v143_v62, %v472_v13  ;;  %v280_v12 = vcombine.low %v221_v59, %v225_v63 }
  0x38   :  { %321 = vst [vmem:[#allocation7] sm:$0xff] %v317_v60  ;;  %v100_v15 = vrot.slane %v38_v36, %v468_v9  ;;  %v158_v5 = vrot.slane %v144_v1, %v472_v13  ;;  %v104_v17 = vrot.slane %v38_v36, %v470_v10  ;;  %v108_v6 = vrot.slane %v38_v36, %v474_v14 }
  0x39   :  { %v281_v16 = vcombine.low %v229_v2, %v233_v3  ;;  %v318_v18 = vmul.f32 %v279_v4, %v181_v0  ;;  %v288_v7 = vrot.slane %v280_v12, %v472_v13  ;;  %v237_v8 = vrot.slane %v42_v46, %v468_v9 }
  0x3a   :  { %v241_v20 = vrot.slane %v42_v46, %v470_v10  ;;  %v159_v21 = vcombine.low %v151_v11, %v158_v5  ;;  %v160_v23 = vcombine.low %v100_v15, %v104_v17  ;;  %v174_v24 = vrot.slane %v108_v6, %v472_v13 }
  0x3b   :  { %v295_v22 = vrot.slane %v281_v16, %v472_v13  ;;  %322 = vst [vmem:[#allocation7 + $0x8] sm:$0xff] %v318_v18  ;;  %v245_v25 = vrot.slane %v42_v46, %v474_v14 }
  0x3c   :  { %v297_v26 = vcombine.low %v237_v8, %v241_v20  ;;  %v182_v27 = vsub.f32 %v45_v19, %v159_v21  ;;  %v167_v29 = vrot.slane %v160_v23, %v472_v13 }
  0x3d   :  { %v296_v28 = vcombine.low %v288_v7, %v295_v22  ;;  %v311_v9 = vrot.slane %v245_v25, %v472_v13 }
  0x3e   :  { %v304_v31 = vrot.slane %v297_v26, %v472_v13  ;;  %v175_v32 = vcombine.low %v167_v29, %v174_v24 }
  0x3f   :  { %v319_v10 = vmul.f32 %v296_v28, %v182_v27 }
  0x40   :  { %v312_v33 = vcombine.low %v304_v31, %v311_v9  ;;  %v183_v34 = vsub.f32 %v46_v30, %v175_v32 }
  0x41   :  { %323 = vst [vmem:[#allocation7 + $0x10] sm:$0xff] %v319_v10 }
  0x42   :  { %v320_v35 = vmul.f32 %v312_v33, %v183_v34 }
  0x44   :  { %324 = vst [vmem:[#allocation7 + $0x18] sm:$0x3f] %v320_v35 }
  0x45   :  { %400 = shalt.err (!%p397_p6)
}
  0x46   :  { %s401_s8 = scalar_lea.hbm %s534_s2, 480 }
  0x47   :  { %p402_p7 = scmp.ne.s32.totalorder %s534_s2, %s401_s8  ;;  %p405_p8 = scmp.lt.u32.totalorder %s401_s8, %s534_s2 }
  0x49   :  { %p407_p9 = pnand %p405_p8, %p402_p7 }
  0x4b   :  { %410 = shalt.err (!%p407_p9)
}
  0x4c   :  { %334 = dma.vmem_to_hbm [thread:$0]  %s332_s4, 480, %s534_s2, [#allocation4]  }
  0x4d   :  { %415 = dma.done.wait [#allocation4], 480  }
  0x4e   :  { %416 = vsyncadd [#allocation4], 4294966816 }
  0x4f   :  { %338 = vsyncpa [#allocation3], 1 }
  0x50   :  { %339 = vsyncpa [#allocation6], 1 }
  0x51   :  { %340 = vsyncpa [#allocation4], 1 }

</bundles_post_ra>
